<compile_context>
chip_gen: v6e
topology: v6e:2x2x1
jax: 0.10.0
libtpu: 0.0.40
codegen_flags: <defaults>
</compile_context>

<pallas_src>
import functools

import jax
import jax.numpy as jnp
from jax.experimental import pallas as pl
from jax.experimental.pallas import tpu as pltpu


def _attention_kernel(x_ref, wqkv_ref, bqkv_ref, wout_ref, bout_ref, o_ref,
                      *, bt, seq, heads, dim_head, inner, eps):
    rows = bt * seq
    d = dim_head

    # ---- LayerNorm statistics only (gamma/beta folded into W_qkv / b_qkv in
    # the wrapper); two-pass variance for numerical robustness, all f32. ----
    x = x_ref[...].astype(jnp.float32)                         # (rows, dim_q)
    mean = jnp.mean(x, axis=-1, keepdims=True)
    xc = x - mean
    var = jnp.mean(xc * xc, axis=-1, keepdims=True)
    x_hat = xc * jax.lax.rsqrt(var + eps)                      # (rows, dim_q)

    # ---- fused Q/K/V projection: bf16 MXU operands, f32 accumulation.
    # (scale folded into Q columns, gamma folded into rows, beta -> f32 bias)
    qkv = jnp.dot(x_hat.astype(jnp.bfloat16), wqkv_ref[...],
                  preferred_element_type=jnp.float32) + bqkv_ref[...]
    qkv = qkv.astype(jnp.bfloat16)       # single full-slab pack (rows, 3*inner)

    # ---- attention per head, batched over the bt sequences in this block ----
    head_outs = []
    for h in range(heads):                                     # static unroll
        qh = qkv[:, h * d:(h + 1) * d].reshape(bt, seq, d)
        kh = qkv[:, inner + h * d: inner + (h + 1) * d].reshape(bt, seq, d)
        vh = qkv[:, 2 * inner + h * d: 2 * inner + (h + 1) * d].reshape(bt, seq, d)

        s = jnp.einsum('bid,bjd->bij', qh, kh,
                       preferred_element_type=jnp.float32)     # (bt, seq, seq)
        m = jnp.max(s, axis=-1, keepdims=True)
        p = jnp.exp(s - m)
        l = jnp.sum(p, axis=-1, keepdims=True)
        attn = (p * pl.reciprocal(l, approx=True)).astype(jnp.bfloat16)

        head_outs.append(jnp.einsum('bij,bjd->bid', attn, vh,
                                    preferred_element_type=jnp.float32))

    # ---- single output projection over the concatenated heads; W_out / b_out
    # are zero-padded to a lane-dense (128-multiple) width in the wrapper so
    # the final store is an unmasked vst. ----
    o = jnp.concatenate(head_outs, axis=-1).astype(jnp.bfloat16)  # (bt,seq,inner)
    y = jnp.dot(o.reshape(rows, inner), wout_ref[...],
                preferred_element_type=jnp.float32) + bout_ref[...]
    o_ref[...] = y.astype(o_ref.dtype)


def _pick_batch_block(batch, seq, target_rows=1024):
    """Row block (in whole sequences) per grid step.  Small problems run as a
    single step (per-step overhead dominates; v5e/v6e have one TensorCore).
    Large problems get the largest divisor of `batch` with bt*seq <= target_rows
    (and an 8-row-aligned block) so v7x can still shard grid steps."""
    if batch * seq <= 2 * target_rows:
        return batch
    best = batch                       # fallback: single step
    for bt in range(1, batch + 1):
        if batch % bt == 0 and bt * seq <= target_rows and (bt * seq) % 8 == 0:
            best = bt
    return best


def attention_forward(x, params, *, heads, dim_head, eps=1e-5):
    """x: (B, N, dim_q) float32.  Self-attention (context = x), eval mode."""
    B, N, dim_q = x.shape
    inner = heads * dim_head
    scale = dim_head ** (-0.5)

    gamma = params["ln_gamma"].astype(jnp.float32)                 # (dim_q,)
    beta = params["ln_beta"].astype(jnp.float32)                   # (dim_q,)

    # Fused QKV weight; fold the attention scale into the Q columns and the
    # LayerNorm affine into the weight/bias:
    #   qkv = (x_hat*gamma + beta) @ W = x_hat @ (diag(gamma) W) + beta @ W
    wqkv_scaled = jnp.concatenate(
        [params["wq"].astype(jnp.float32) * scale,
         params["wkv"].astype(jnp.float32)], axis=1)               # (dim_q, 3*inner)
    bqkv = beta[None, :] @ wqkv_scaled                             # (1, 3*inner) f32
    wqkv = (gamma[:, None] * wqkv_scaled).astype(jnp.bfloat16)     # (dim_q, 3*inner)

    # Lane-dense output projection: zero-pad columns to a multiple of 128.
    dq_pad = pl.cdiv(dim_q, 128) * 128
    wout = (jnp.zeros((inner, dq_pad), jnp.float32)
            .at[:, :dim_q].set(params["wout"].astype(jnp.float32))
            .astype(jnp.bfloat16))                                 # (inner, dq_pad)
    bout = (jnp.zeros((1, dq_pad), jnp.float32)
            .at[:, :dim_q].set(params["bout"].astype(jnp.float32).reshape(1, dim_q)))

    bt = _pick_batch_block(B, N)
    rows_per_block = bt * N
    x2 = x.reshape(B * N, dim_q)

    kernel = functools.partial(
        _attention_kernel, bt=bt, seq=N, heads=heads, dim_head=dim_head,
        inner=inner, eps=eps)

    out2 = pl.pallas_call(
        kernel,
        out_shape=jax.ShapeDtypeStruct((B * N, dq_pad), x.dtype),
        grid_spec=pltpu.PrefetchScalarGridSpec(
            num_scalar_prefetch=0,
            grid=(B // bt,),
            in_specs=[
                pl.BlockSpec((rows_per_block, dim_q), lambda i: (i, 0)),  # x rows
                pl.BlockSpec((dim_q, 3 * inner), lambda i: (0, 0)),       # W_qkv (bf16)
                pl.BlockSpec((1, 3 * inner), lambda i: (0, 0)),           # b_qkv (f32)
                pl.BlockSpec((inner, dq_pad), lambda i: (0, 0)),          # W_out (bf16)
                pl.BlockSpec((1, dq_pad), lambda i: (0, 0)),              # b_out (f32)
            ],
            out_specs=pl.BlockSpec((rows_per_block, dq_pad), lambda i: (i, 0)),
        ),
        compiler_params=pltpu.CompilerParams(
            dimension_semantics=("parallel",)),
    )(x2, wqkv, bqkv, wout, bout)

    return out2[:, :dim_q].reshape(B, N, dim_q)


def _reference(x, params, *, heads, dim_head, eps=1e-5):
    """Pure-JAX reference matching the PyTorch module (eval, context=None)."""
    inner = heads * dim_head
    mu = jnp.mean(x, axis=-1, keepdims=True)
    var = jnp.mean((x - mu) ** 2, axis=-1, keepdims=True)
    xn = (x - mu) / jnp.sqrt(var + eps) * params["ln_gamma"] + params["ln_beta"]
    q = xn @ params["wq"]
    kv = xn @ params["wkv"]
    k, v = kv[..., :inner], kv[..., inner:]

    def split_heads(t):
        b, n, _ = t.shape
        return t.reshape(b, n, heads, dim_head).transpose(0, 2, 1, 3)

    q, k, v = map(split_heads, (q, k, v))
    dots = jnp.einsum("bhid,bhjd->bhij", q, k) * (dim_head ** -0.5)
    attn = jax.nn.softmax(dots, axis=-1)
    out = jnp.einsum("bhij,bhjd->bhid", attn, v)
    out = out.transpose(0, 2, 1, 3).reshape(x.shape[0], x.shape[1], inner)
    return out @ params["wout"] + params["bout"]


if __name__ == "__main__":
    # Small, module-consistent shapes.
    B, N = 2, 8
    dim_q = 32          # dim_q
    dimvq = 32          # dimvq (context dim; == dim_q since context defaults to x)
    heads, dim_head = 2, 16
    inner = heads * dim_head

    key = jax.random.PRNGKey(0)
    kx, kq, kkv, kwo, kbo, kg, kb = jax.random.split(key, 7)

    x = jax.random.normal(kx, (B, N, dim_q), dtype=jnp.float32)
    params = {
        "ln_gamma": 1.0 + 0.1 * jax.random.normal(kg, (dim_q,), dtype=jnp.float32),
        "ln_beta": 0.1 * jax.random.normal(kb, (dim_q,), dtype=jnp.float32),
        "wq": jax.random.normal(kq, (dim_q, inner), dtype=jnp.float32) * 0.05,
        "wkv": jax.random.normal(kkv, (dimvq, 2 * inner), dtype=jnp.float32) * 0.05,
        "wout": jax.random.normal(kwo, (inner, dim_q), dtype=jnp.float32) * 0.05,
        "bout": jax.random.normal(kbo, (dim_q,), dtype=jnp.float32) * 0.05,
    }

    out = attention_forward(x, params, heads=heads, dim_head=dim_head)
    out = jax.block_until_ready(out)

    ref = _reference(x, params, heads=heads, dim_head=dim_head)
    assert out.shape == (B, N, dim_q)
    max_err = float(jnp.max(jnp.abs(out - ref)))
    # bf16 MXU operands + approx reciprocal -> relaxed tolerance.
    assert jnp.allclose(out, ref, atol=2e-2, rtol=2e-2), max_err

    print("KERNEL_OK")
</pallas_src>

<mosaic_0001>
module attributes {stable_mosaic.version = 11 : i64} {
  func.func @_attention_kernel(%arg0: i32, %arg1: memref<16x32xf32, #tpu.memory_space<vmem>>, %arg2: memref<32x96xbf16, #tpu.memory_space<vmem>>, %arg3: memref<1x96xf32, #tpu.memory_space<vmem>>, %arg4: memref<32x128xbf16, #tpu.memory_space<vmem>>, %arg5: memref<1x128xf32, #tpu.memory_space<vmem>>, %arg6: memref<16x128xf32, #tpu.memory_space<vmem>>) attributes {dimension_semantics = [#tpu.dimension_semantics<parallel>], iteration_bounds = array<i64: 1>, scalar_prefetch = 0 : i64, scratch_operands = 0 : i64, tpu.core_type = #tpu.core_type<tc>, window_params = [{transform_indices = @transform_0, window_bounds = array<i64: 16, 32>}, {pipeline_mode = #tpu.pipeline_mode<synchronous>, transform_indices = @transform_1, window_bounds = array<i64: 32, 96>}, {pipeline_mode = #tpu.pipeline_mode<synchronous>, transform_indices = @transform_2, window_bounds = array<i64: 1, 96>}, {pipeline_mode = #tpu.pipeline_mode<synchronous>, transform_indices = @transform_3, window_bounds = array<i64: 32, 128>}, {pipeline_mode = #tpu.pipeline_mode<synchronous>, transform_indices = @transform_4, window_bounds = array<i64: 1, 128>}, {transform_indices = @transform_5, window_bounds = array<i64: 16, 128>}]} {
    %c0 = arith.constant 0 : index
    %c0_0 = arith.constant 0 : index
    %0 = vector.load %arg1[%c0, %c0_0] : memref<16x32xf32, #tpu.memory_space<vmem>>, vector<16x32xf32>
    %cst = arith.constant dense<0.000000e+00> : vector<16xf32>
    %1 = vector.multi_reduction <add>, %0, %cst [1] : vector<16x32xf32> to vector<16xf32>
    %2 = vector.shape_cast %1 : vector<16xf32> to vector<16x1xf32>
    %cst_1 = arith.constant 3.200000e+01 : f32
    %3 = vector.broadcast %cst_1 : f32 to vector<16x1xf32>
    %4 = arith.divf %2, %3 : vector<16x1xf32>
    %5 = vector.broadcast %4 : vector<16x1xf32> to vector<16x32xf32>
    %6 = arith.subf %0, %5 : vector<16x32xf32>
    %7 = arith.mulf %6, %6 : vector<16x32xf32>
    %cst_2 = arith.constant dense<0.000000e+00> : vector<16xf32>
    %8 = vector.multi_reduction <add>, %7, %cst_2 [1] : vector<16x32xf32> to vector<16xf32>
    %9 = vector.shape_cast %8 : vector<16xf32> to vector<16x1xf32>
    %cst_3 = arith.constant 3.200000e+01 : f32
    %10 = vector.broadcast %cst_3 : f32 to vector<16x1xf32>
    %11 = arith.divf %9, %10 : vector<16x1xf32>
    %cst_4 = arith.constant 9.99999974E-6 : f32
    %12 = vector.broadcast %cst_4 : f32 to vector<16x1xf32>
    %13 = arith.addf %11, %12 : vector<16x1xf32>
    %14 = math.rsqrt %13 : vector<16x1xf32>
    %15 = vector.broadcast %14 : vector<16x1xf32> to vector<16x32xf32>
    %16 = arith.mulf %6, %15 : vector<16x32xf32>
    %17 = arith.truncf %16 : vector<16x32xf32> to vector<16x32xbf16>
    %c0_5 = arith.constant 0 : index
    %c0_6 = arith.constant 0 : index
    %18 = vector.load %arg2[%c0_5, %c0_6] : memref<32x96xbf16, #tpu.memory_space<vmem>>, vector<32x96xbf16>
    %cst_7 = arith.constant dense<0.000000e+00> : vector<16x96xf32>
    %19 = tpu.matmul %17, %18, %cst_7 {dimension_numbers = #tpu.dot_dimension_numbers<[1], [0], [0], [1], [0, 0, 1, 1], [], []>} : vector<16x32xbf16>, vector<32x96xbf16>, vector<16x96xf32> -> vector<16x96xf32>
    %c0_8 = arith.constant 0 : index
    %c0_9 = arith.constant 0 : index
    %20 = vector.load %arg3[%c0_8, %c0_9] : memref<1x96xf32, #tpu.memory_space<vmem>>, vector<1x96xf32>
    %21 = vector.broadcast %20 : vector<1x96xf32> to vector<16x96xf32>
    %22 = arith.addf %19, %21 : vector<16x96xf32>
    %23 = arith.truncf %22 : vector<16x96xf32> to vector<16x96xbf16>
    %24 = vector.extract_strided_slice %23 {offsets = [0, 0], sizes = [16, 16], strides = [1, 1]} : vector<16x96xbf16> to vector<16x16xbf16>
    %25 = vector.shape_cast %24 : vector<16x16xbf16> to vector<2x8x16xbf16>
    %26 = vector.extract_strided_slice %23 {offsets = [0, 32], sizes = [16, 16], strides = [1, 1]} : vector<16x96xbf16> to vector<16x16xbf16>
    %27 = vector.shape_cast %26 : vector<16x16xbf16> to vector<2x8x16xbf16>
    %28 = vector.extract_strided_slice %23 {offsets = [0, 64], sizes = [16, 16], strides = [1, 1]} : vector<16x96xbf16> to vector<16x16xbf16>
    %29 = vector.shape_cast %28 : vector<16x16xbf16> to vector<2x8x16xbf16>
    "tpu.trace_start"() <{level = 10 : i32, message = "bid,bjd->bij"}> : () -> ()
    %cst_10 = arith.constant dense<0.000000e+00> : vector<2x8x8xf32>
    %30 = tpu.matmul %25, %27, %cst_10 {dimension_numbers = #tpu.dot_dimension_numbers<[2], [2], [1], [1], [0, 0, 0, 1, 1, 1], [0], [0]>} : vector<2x8x16xbf16>, vector<2x8x16xbf16>, vector<2x8x8xf32> -> vector<2x8x8xf32>
    "tpu.trace_stop"() : () -> ()
    %cst_11 = arith.constant dense<0xFF800000> : vector<2x8xf32>
    %31 = vector.multi_reduction <maximumf>, %30, %cst_11 [2] : vector<2x8x8xf32> to vector<2x8xf32>
    %32 = vector.shape_cast %31 : vector<2x8xf32> to vector<2x8x1xf32>
    %33 = vector.broadcast %32 : vector<2x8x1xf32> to vector<2x8x8xf32>
    %34 = arith.subf %30, %33 : vector<2x8x8xf32>
    %35 = math.exp %34 : vector<2x8x8xf32>
    %cst_12 = arith.constant dense<0.000000e+00> : vector<2x8xf32>
    %36 = vector.multi_reduction <add>, %35, %cst_12 [2] : vector<2x8x8xf32> to vector<2x8xf32>
    %37 = vector.shape_cast %36 : vector<2x8xf32> to vector<2x8x1xf32>
    %38 = tpu.reciprocal %37 {approx = true} : vector<2x8x1xf32> -> vector<2x8x1xf32>
    %39 = vector.broadcast %38 : vector<2x8x1xf32> to vector<2x8x8xf32>
    %40 = arith.mulf %35, %39 : vector<2x8x8xf32>
    %41 = arith.truncf %40 : vector<2x8x8xf32> to vector<2x8x8xbf16>
    "tpu.trace_start"() <{level = 10 : i32, message = "bij,bjd->bid"}> : () -> ()
    %cst_13 = arith.constant dense<0.000000e+00> : vector<2x8x16xf32>
    %42 = tpu.matmul %41, %29, %cst_13 {dimension_numbers = #tpu.dot_dimension_numbers<[2], [1], [1], [2], [0, 0, 0, 1, 1, 2], [0], [0]>} : vector<2x8x8xbf16>, vector<2x8x16xbf16>, vector<2x8x16xf32> -> vector<2x8x16xf32>
    "tpu.trace_stop"() : () -> ()
    %43 = vector.extract_strided_slice %23 {offsets = [0, 16], sizes = [16, 16], strides = [1, 1]} : vector<16x96xbf16> to vector<16x16xbf16>
    %44 = vector.shape_cast %43 : vector<16x16xbf16> to vector<2x8x16xbf16>
    %45 = vector.extract_strided_slice %23 {offsets = [0, 48], sizes = [16, 16], strides = [1, 1]} : vector<16x96xbf16> to vector<16x16xbf16>
    %46 = vector.shape_cast %45 : vector<16x16xbf16> to vector<2x8x16xbf16>
    %47 = vector.extract_strided_slice %23 {offsets = [0, 80], sizes = [16, 16], strides = [1, 1]} : vector<16x96xbf16> to vector<16x16xbf16>
    %48 = vector.shape_cast %47 : vector<16x16xbf16> to vector<2x8x16xbf16>
    "tpu.trace_start"() <{level = 10 : i32, message = "bid,bjd->bij"}> : () -> ()
    %cst_14 = arith.constant dense<0.000000e+00> : vector<2x8x8xf32>
    %49 = tpu.matmul %44, %46, %cst_14 {dimension_numbers = #tpu.dot_dimension_numbers<[2], [2], [1], [1], [0, 0, 0, 1, 1, 1], [0], [0]>} : vector<2x8x16xbf16>, vector<2x8x16xbf16>, vector<2x8x8xf32> -> vector<2x8x8xf32>
    "tpu.trace_stop"() : () -> ()
    %cst_15 = arith.constant dense<0xFF800000> : vector<2x8xf32>
    %50 = vector.multi_reduction <maximumf>, %49, %cst_15 [2] : vector<2x8x8xf32> to vector<2x8xf32>
    %51 = vector.shape_cast %50 : vector<2x8xf32> to vector<2x8x1xf32>
    %52 = vector.broadcast %51 : vector<2x8x1xf32> to vector<2x8x8xf32>
    %53 = arith.subf %49, %52 : vector<2x8x8xf32>
    %54 = math.exp %53 : vector<2x8x8xf32>
    %cst_16 = arith.constant dense<0.000000e+00> : vector<2x8xf32>
    %55 = vector.multi_reduction <add>, %54, %cst_16 [2] : vector<2x8x8xf32> to vector<2x8xf32>
    %56 = vector.shape_cast %55 : vector<2x8xf32> to vector<2x8x1xf32>
    %57 = tpu.reciprocal %56 {approx = true} : vector<2x8x1xf32> -> vector<2x8x1xf32>
    %58 = vector.broadcast %57 : vector<2x8x1xf32> to vector<2x8x8xf32>
    %59 = arith.mulf %54, %58 : vector<2x8x8xf32>
    %60 = arith.truncf %59 : vector<2x8x8xf32> to vector<2x8x8xbf16>
    "tpu.trace_start"() <{level = 10 : i32, message = "bij,bjd->bid"}> : () -> ()
    %cst_17 = arith.constant dense<0.000000e+00> : vector<2x8x16xf32>
    %61 = tpu.matmul %60, %48, %cst_17 {dimension_numbers = #tpu.dot_dimension_numbers<[2], [1], [1], [2], [0, 0, 0, 1, 1, 2], [0], [0]>} : vector<2x8x8xbf16>, vector<2x8x16xbf16>, vector<2x8x16xf32> -> vector<2x8x16xf32>
    "tpu.trace_stop"() : () -> ()
    %62 = tpu.concatenate %42, %61 in 2 : vector<2x8x16xf32>, vector<2x8x16xf32> -> vector<2x8x32xf32>
    %63 = arith.truncf %62 : vector<2x8x32xf32> to vector<2x8x32xbf16>
    %64 = vector.shape_cast %63 : vector<2x8x32xbf16> to vector<16x32xbf16>
    %c0_18 = arith.constant 0 : index
    %c0_19 = arith.constant 0 : index
    %65 = vector.load %arg4[%c0_18, %c0_19] : memref<32x128xbf16, #tpu.memory_space<vmem>>, vector<32x128xbf16>
    %cst_20 = arith.constant dense<0.000000e+00> : vector<16x128xf32>
    %66 = tpu.matmul %64, %65, %cst_20 {dimension_numbers = #tpu.dot_dimension_numbers<[1], [0], [0], [1], [0, 0, 1, 1], [], []>} : vector<16x32xbf16>, vector<32x128xbf16>, vector<16x128xf32> -> vector<16x128xf32>
    %c0_21 = arith.constant 0 : index
    %c0_22 = arith.constant 0 : index
    %67 = vector.load %arg5[%c0_21, %c0_22] : memref<1x128xf32, #tpu.memory_space<vmem>>, vector<1x128xf32>
    %68 = vector.broadcast %67 : vector<1x128xf32> to vector<16x128xf32>
    %69 = arith.addf %66, %68 : vector<16x128xf32>
    %c0_23 = arith.constant 0 : index
    %c0_24 = arith.constant 0 : index
    %70 = vector.load %arg6[%c0_23, %c0_24] : memref<16x128xf32, #tpu.memory_space<vmem>>, vector<16x128xf32>
    tpu.vector_store %arg6[%c0_23, %c0_24], %69 {strides = array<i32>} : memref<16x128xf32, #tpu.memory_space<vmem>>, vector<16x128xf32>,
    return
  }
  func.func @transform_0(%arg0: i32) -> (i32, i32) {
    %c0_i32 = arith.constant 0 : i32
    %c0_i32_0 = arith.constant 0 : i32
    return %arg0, %c0_i32 : i32, i32
  }
  func.func @transform_1(%arg0: i32) -> (i32, i32) {
    %c0_i32 = arith.constant 0 : i32
    %c0_i32_0 = arith.constant 0 : i32
    %c0_i32_1 = arith.constant 0 : i32
    return %c0_i32, %c0_i32_0 : i32, i32
  }
  func.func @transform_2(%arg0: i32) -> (i32, i32) {
    %c0_i32 = arith.constant 0 : i32
    %c0_i32_0 = arith.constant 0 : i32
    %c0_i32_1 = arith.constant 0 : i32
    return %c0_i32, %c0_i32_0 : i32, i32
  }
  func.func @transform_3(%arg0: i32) -> (i32, i32) {
    %c0_i32 = arith.constant 0 : i32
    %c0_i32_0 = arith.constant 0 : i32
    %c0_i32_1 = arith.constant 0 : i32
    return %c0_i32, %c0_i32_0 : i32, i32
  }
  func.func @transform_4(%arg0: i32) -> (i32, i32) {
    %c0_i32 = arith.constant 0 : i32
    %c0_i32_0 = arith.constant 0 : i32
    %c0_i32_1 = arith.constant 0 : i32
    return %c0_i32, %c0_i32_0 : i32, i32
  }
  func.func @transform_5(%arg0: i32) -> (i32, i32) {
    %c0_i32 = arith.constant 0 : i32
    %c0_i32_0 = arith.constant 0 : i32
    return %arg0, %c0_i32 : i32, i32
  }
}

</mosaic_0001>

<bundles_post_ra>
// kernel: tpu_custom_call.1
= control target key start
LH: loop header
LB: loop body
LE: loop exit
PB: predicated region body
PF: predicated region fallthrough
CT: control target
= control target key end

     0   :  { %10 = vsyncpa [#allocation3], 0  ;;  %s1109_s0 = inlined_call_operand.hbm [shape: f32[16,32], index: 0, kind: input, shape index: {}]   ;;  %s1110_s1 = inlined_call_operand.hbm [shape: bf16[32,96], index: 1, kind: input, shape index: {}]   ;;  %s1111_s2 = inlined_call_operand.vmem [shape: f32[1,96], index: 2, kind: input, shape index: {}]   ;;  %s1112_s3 = inlined_call_operand.hbm [shape: bf16[32,128], index: 3, kind: input, shape index: {}]   ;;  %s1113_s4 = inlined_call_operand.vmem [shape: f32[1,128], index: 4, kind: input, shape index: {}]   ;;  %s1114_s5 = inlined_call_operand.hbm [shape: f32[16,128], index: 5, kind: output, shape index: {}]  }
   0x1   :  { %11 = vsyncpa [#allocation6], 0 }
   0x2   :  { %12 = vsyncpa [#allocation4], 0  ;;  %s948_s18 = smov [#allocation5]  }
   0x3   :  { %s30_s19 = sshll.u32 %s948_s18, 4  ;;  %s31_s19 = int_to_ptr.vmem [resolvable:$true] %s30_s19 }
   0x4   :  { %s870_s20 = scalar_lea.vmem %s31_s19, 256  ;;  %p875_p1 = scmp.lt.s32.totalorder %s31_s19, %s31_s19 }
   0x5   :  { %p871_p0 = scmp.ne.s32.totalorder %s31_s19, %s870_s20  ;;  %p876_p2 = scmp.lt.s32.totalorder %s870_s20, %s870_s20 }
   0x7   :  { %p877_p3 = por %p876_p2, %p875_p1 }
   0x9   :  { %p878_p4 = pnand %p877_p3, %p871_p0 }
   0xb   :  { %881 = shalt.err (!%p878_p4)
}
   0xc   :  { %s949_s21 = smov 64   ;;  %s950_s22 = smov 4  }
   0xd   :  { %36 = dma.hbm_to_vmem [thread:$0]  %s1110_s1, 256, %s31_s19, [#allocation6], %s949_s21, %s949_s21, %s950_s22  }
   0xe   :  { %s951_s25 = smov [#allocation2]  }
   0xf   :  { %s18_s26 = sshll.u32 %s951_s25, 4  ;;  %s19_s26 = int_to_ptr.vmem [resolvable:$true] %s18_s26 }
  0x10   :  { %s890_s27 = scalar_lea.vmem %s19_s26, 256  ;;  %p895_p6 = scmp.lt.s32.totalorder %s19_s26, %s19_s26 }
  0x11   :  { %p891_p5 = scmp.ne.s32.totalorder %s19_s26, %s890_s27  ;;  %p896_p7 = scmp.lt.s32.totalorder %s890_s27, %s890_s27 }
  0x13   :  { %p897_p8 = por %p896_p7, %p895_p6 }
  0x15   :  { %p898_p9 = pnand %p897_p8, %p891_p5 }
  0x17   :  { %901 = shalt.err (!%p898_p9)
}
  0x18   :  { %s952_s28 = smov 128   ;;  %s953_s29 = smov 8  }
  0x19   :  { %24 = dma.hbm_to_vmem [thread:$0]  %s1109_s0, 256, %s19_s26, [#allocation3], %s952_s28, %s952_s28, %s953_s29  }
  0x1a   :  { %s954_s1 = smov [#allocation7]  }
  0x1b   :  { %s44_s7 = sshll.u32 %s954_s1, 4  ;;  %s45_s7 = int_to_ptr.vmem [resolvable:$true] %s44_s7 }
  0x1c   :  { %s910_s8 = scalar_lea.vmem %s45_s7, 256  ;;  %p915_p11 = scmp.lt.s32.totalorder %s45_s7, %s45_s7 }
  0x1d   :  { %p911_p10 = scmp.ne.s32.totalorder %s45_s7, %s910_s8  ;;  %p916_p12 = scmp.lt.s32.totalorder %s910_s8, %s910_s8 }
  0x1f   :  { %p917_p13 = por %p916_p12, %p915_p11 }
  0x21   :  { %p918_p0 = pnand %p917_p13, %p911_p10 }
  0x23   :  { %921 = shalt.err (!%p918_p0)
}
  0x24   :  { %50 = dma.hbm_to_vmem [thread:$0]  %s1112_s3, 256, %s45_s7, [#allocation6], %s949_s21, %s949_s21, %s950_s22  }
  0x25   :  { %942 = dma.done.wait [#allocation3], 256  }
  0x26   :  { %943 = vsyncadd [#allocation3], 4294967040 }
  0x27   :  { %944 = dma.done.wait [#allocation6], 512  }
  0x28   :  { %945 = vsyncadd [#allocation6], 4294966784  ;;  %vm65_vm0 = vcmask 261120   ;;  %v63_v0 = vld [vmem:[#allocation2] sm:$0xff]  ;;  %v64_v1 = vld [vmem:[#allocation2 + $0x8] sm:$0xff]  ;;  %v955_v15 = vmov 0.0  }
  0x29   :  { %v66_v2 = vsel %vm65_vm0, %v63_v0, 0.0  ;;  %v69_v3 = vsel %vm65_vm0, %v64_v1, 0.0  ;;  %v838_v14 = vld [vmem:[#allocation5 + $0x8] sm:$0xff]   ;;  %754 = vmatprep.subr.bf16.mxu0 %v955_v15  ;;  %vm956_vm1 = vmmov 0   ;;  %v839_v16 = vld [vmem:[#allocation5] sm:$0xff]   ;;  %762 = vmatprep.subr.bf16.mxu1 %v955_v15  ;;  %s957_s11 = smov 96  }
  0x2a   :  { %67 = vadd.xlane.f32.xlu0 %v66_v2  ;;  %758 = vmatprep.mubr.msk.bf16.mxu0 %vm956_vm1, %v955_v15  ;;  %v710_v28 = vld [vmem:[%s1111_s2] ss:$0 sm:$0xff]  ;;  %vm169_vm2 = vcmask 130048   ;;  %vm264_vm3 = vcmask 64512   ;;  %s958_s2 = smov 80   ;;  %vm294_vm4 = vcmask 1043456  }
  0x2b   :  { %755 = vmatpush3.bf16.msra.mxu0 %v838_v14  ;;  %764 = vmatprep.mubr.msk.bf16.mxu1 %vm956_vm1, %v955_v15  ;;  %s959_s12 = smov 112   ;;  %s960_s13 = smov 48  }
  0x2c   :  { %756 = vmatprep.subr.bf16.mxu0 %v955_v15  ;;  %s961_s14 = smov 16   ;;  %s962_s17 = smov [#allocation8]  }
  0x2d   :  { %s697_s18 = sshll.u32 %s962_s17, 4  ;;  %s698_s18 = int_to_ptr.vmem [resolvable:$true] %s697_s18 }
  0x2e   :  { %70 = vadd.xlane.f32.xlu0 %v69_v3  ;;  %s922_s19 = scalar_lea.vmem %s698_s18, 256  ;;  %p927_p2 = scmp.lt.s32.totalorder %s698_s18, %s698_s18 }
  0x2f   :  { %757 = vmatpush3.bf16.msra.mxu0 %v839_v16  ;;  %p923_p1 = scmp.ne.s32.totalorder %s698_s18, %s922_s19  ;;  %p928_p3 = scmp.lt.s32.totalorder %s922_s19, %s922_s19 }
  0x30   :  { %768 = vmatprep.subr.bf16.mxu0 %v955_v15 }
  0x31   :  { %p929_p4 = por %p928_p3, %p927_p2 }
  0x33   :  { %p930_p5 = pnand %p929_p4, %p923_p1 }
  0xb3   :  { %v68_v4 = vpop.xlane.xlu0 %67 }
  0xb4   :  { %v73_v5 = vmul.f32 0.03125, %v68_v4 }
  0xb6   :  { %v75_v6 = vsub.f32 %v63_v0, %v73_v5 }
  0xb7   :  { %v71_v7 = vpop.xlane.xlu0 %70 }
  0xb8   :  { %v74_v8 = vmul.f32 0.03125, %v71_v7  ;;  %v77_v9 = vmul.f32 %v75_v6, %v75_v6 }
  0xba   :  { %v76_v10 = vsub.f32 %v64_v1, %v74_v8  ;;  %v79_v11 = vsel %vm65_vm0, %v77_v9, 0.0 }
  0xbb   :  { %80 = vadd.xlane.f32.xlu1 %v79_v11 }
  0xbc   :  { %v78_v12 = vmul.f32 %v76_v10, %v76_v10 }
  0xbe   :  { %v82_v13 = vsel %vm65_vm0, %v78_v12, 0.0 }
  0xbf   :  { %83 = vadd.xlane.f32.xlu1 %v82_v13 }
 0x144   :  { %v81_v17 = vpop.xlane.xlu1 %80 }
 0x145   :  { %v85_v18 = vmul.f32 0.03125, %v81_v17 }
 0x147   :  { %v87_v19 = vadd.f32 1e-05, %v85_v18 }
 0x148   :  { %v84_v20 = vpop.xlane.xlu1 %83 }
 0x149   :  { %v86_v21 = vmul.f32 0.03125, %v84_v20  ;;  %842 = vrsqrt.f32 %v87_v19 }
 0x14b   :  { %v88_v22 = vadd.f32 1e-05, %v86_v21 }
 0x14d   :  { %844 = vrsqrt.f32 %v88_v22 }
 0x156   :  { %v843_v23 = vpop.eup %842 }
 0x157   :  { %v91_v25 = vmul.f32 %v843_v23, %v75_v6 }
 0x15a   :  { %v845_v24 = vpop.eup %844 }
 0x15b   :  { %v92_v26 = vmul.f32 %v845_v24, %v76_v10 }
 0x15d   :  { %v93_v27 = vpack.c.bf16 %v92_v26, %v91_v25 }
 0x15f   :  { %759 = vmatmul.mubr.msk.bf16.vlgmr.msra.gmra.mxu0 %vm65_vm0, %v93_v27 }
 0x160   :  { %770 = vmatprep.mubr.msk.bf16.mxu0 %vm956_vm1, %v955_v15 }
 0x21f   :  { %v154_v29 = vpop.f32.mrf.mxu0 }
 0x220   :  { %v155_v30 = vadd.f32 %v710_v28, %v154_v29 }
 0x221   :  { %v760_v31 = vpop.f32.mrf.mxu0 }
 0x222   :  { %v1027_v32 = vpack.c.bf16 %v155_v30, %v155_v30 }
 0x223   :  { %v157_v33 = vpop.f32.mrf.mxu0 }
 0x224   :  { %v158_v34 = vadd.f32 %v710_v28, %v157_v33  ;;  %167 = vrot.lane.b32.xlu0 %v1027_v32, %s957_s11 }
 0x225   :  { %v761_v35 = vpop.f32.mrf.mxu0 }
 0x226   :  { %v1030_v36 = vpack.c.bf16 %v158_v34, %v158_v34 }
 0x228   :  { %216 = vrot.lane.b32.xlu1 %v1030_v36, %s957_s11 }
 0x296   :  { %v168_v37 = vpop.permute.xlu0 %167 }
 0x297   :  { %v174_v38 = vsel %vm169_vm2, %v168_v37, 0 }
 0x298   :  { %763 = vmatpush3.bf16.xpose.msra.mxu1 %v174_v38 }
 0x299   :  { %774 = vmatprep.subr.bf16.mxu1 %v955_v15 }
 0x29a   :  { %v217_v39 = vpop.permute.xlu1 %216 }
 0x29b   :  { %v222_v40 = vsel %vm169_vm2, %v217_v39, 0 }
 0x29c   :  { %769 = vmatpush3.bf16.xpose.msra.mxu0 %v222_v40 }
 0x29d   :  { %780 = vmatprep.subr.bf16.mxu0 %v955_v15 }
 0x29f   :  { %765 = vmatmul.mubr.msk.bf16.vlgmr.msra.gmra.mxu1 %vm169_vm2, %v1027_v32 }
 0x2a0   :  { %776 = vmatprep.mubr.msk.bf16.mxu1 %vm956_vm1, %v955_v15 }
 0x2a3   :  { %771 = vmatmul.mubr.msk.bf16.vlgmr.msra.gmra.mxu0 %vm169_vm2, %v1030_v36 }
 0x2a4   :  { %782 = vmatprep.mubr.msk.bf16.mxu0 %vm956_vm1, %v955_v15 }
 0x35f   :  { %v210_v41 = vpop.f32.mrf.mxu1 }
 0x360   :  { %v265_v42 = vsel %vm264_vm3, %v210_v41, -inf }
 0x361   :  { %v766_v43 = vpop.f32.mrf.mxu1  ;;  %266 = vmax.xlane.f32.xlu1 %v265_v42 }
 0x363   :  { %v213_v44 = vpop.f32.mrf.mxu1  ;;  %v258_v45 = vpop.f32.mrf.mxu0 }
 0x364   :  { %v268_v46 = vsel %vm264_vm3, %v258_v45, -inf }
 0x365   :  { %v767_v47 = vpop.f32.mrf.mxu1  ;;  %269 = vmax.xlane.f32.xlu0 %v268_v46  ;;  %v772_v48 = vpop.f32.mrf.mxu0 }
 0x367   :  { %v261_v49 = vpop.f32.mrf.mxu0 }
 0x369   :  { %v773_v50 = vpop.f32.mrf.mxu0 }
 0x372   :  { %338 = vrot.lane.b32.xlu1 %v1030_v36, %s949_s21 }
 0x376   :  { %388 = vrot.lane.b32.xlu1 %v1027_v32, %s958_s2 }
 0x3ea   :  { %v267_v51 = vpop.xlane.xlu1 %266 }
 0x3eb   :  { %v271_v52 = vsub.f32 %v210_v41, %v267_v51 }
 0x3ed   :  { %v273_v53 = vmul.f32 1.442695, %v271_v52 }
 0x3ee   :  { %v339_v54 = vpop.permute.xlu1 %338  ;;  %v270_v55 = vpop.xlane.xlu0 %269 }
 0x3ef   :  { %846 = vpow2.f32 %v273_v53  ;;  %v344_v56 = vsel %vm294_vm4, %v339_v54, 0  ;;  %v272_v57 = vsub.f32 %v258_v45, %v270_v55 }
 0x3f0   :  { %781 = vmatpush3.bf16.msra.mxu0 %v344_v56  ;;  %v840_v56 = vld [vmem:[#allocation7 + $0x8] sm:$0xff]  }
 0x3f1   :  { %v275_v58 = vmul.f32 1.442695, %v272_v57  ;;  %792 = vmatprep.subr.bf16.mxu0 %v955_v15  ;;  %v841_v57 = vld [vmem:[#allocation7] sm:$0xff]  }
 0x3f2   :  { %v389_v63 = vpop.permute.xlu1 %388 }
 0x3f3   :  { %848 = vpow2.f32 %v275_v58  ;;  %v394_v8 = vsel %vm169_vm2, %v389_v63, 0 }
 0x3fc   :  { %v847_v59 = vpop.eup %846 }
 0x3fd   :  { %v277_v60 = vsel %vm264_vm3, %v847_v59, 0.0 }
 0x3fe   :  { %278 = vadd.xlane.f32.xlu0 %v277_v60 }
 0x400   :  { %v849_v61 = vpop.eup %848 }
 0x401   :  { %v280_v62 = vsel %vm264_vm3, %v849_v61, 0.0 }
 0x402   :  { %281 = vadd.xlane.f32.xlu1 %v280_v62 }
 0x413   :  { %438 = vrot.lane.b32.xlu1 %v1030_v36, %s958_s2 }
 0x414   :  { %289 = vrot.lane.b32.xlu0 %v1027_v32, %s949_s21 }
 0x417   :  { %436 = vrot.lane.b32.xlu1 %v1030_v36, %s959_s12 }
 0x418   :  { %386 = vrot.lane.b32.xlu0 %v1027_v32, %s959_s12 }
 0x487   :  { %v279_v0 = vpop.xlane.xlu0 %278 }
 0x488   :  { %850 = vrcp.f32 %v279_v0 }
 0x48b   :  { %v282_v1 = vpop.xlane.xlu1 %281  ;;  %v290_v2 = vpop.permute.xlu0 %289 }
 0x48c   :  { %852 = vrcp.f32 %v282_v1  ;;  %v296_v3 = vsel %vm294_vm4, %v290_v2, 0 }
 0x48d   :  { %775 = vmatpush3.bf16.msra.mxu1 %v296_v3 }
 0x48e   :  { %786 = vmatprep.subr.bf16.mxu1 %v955_v15 }
 0x48f   :  { %v439_v10 = vpop.permute.xlu1 %438  ;;  %v387_v13 = vpop.permute.xlu0 %386 }
 0x490   :  { %v444_v12 = vsel %vm169_vm2, %v439_v10, 0 }
 0x493   :  { %v437_v14 = vpop.permute.xlu1 %436 }
 0x495   :  { %v851_v4 = vpop.eup %850 }
 0x496   :  { %v285_v5 = vmul.f32 %v851_v4, %v847_v59 }
 0x498   :  { %v287_v6 = vpack.c.bf16 %v285_v5, %v285_v5 }
 0x499   :  { %v853_v7 = vpop.eup %852 }
 0x49a   :  { %777 = vmatmul.mubr.msk.bf16.vlgmr.msra.gmra.mxu1 %vm264_vm3, %v287_v6  ;;  %v286_v9 = vmul.f32 %v853_v7, %v849_v61 }
 0x49b   :  { %787 = vmatpush3.bf16.xpose.msra.mxu1 %v394_v8  ;;  %788 = vmatprep.mubr.msk.bf16.mxu1 %vm956_vm1, %v955_v15  ;;  %v724_v8 = vld [vmem:[%s1113_s4] ss:$0 sm:$0xff] }
 0x49c   :  { %v288_v11 = vpack.c.bf16 %v286_v9, %v286_v9  ;;  %798 = vmatprep.subr.bf16.mxu1 %v955_v15 }
 0x49e   :  { %783 = vmatmul.mubr.msk.bf16.vlgmr.msra.gmra.mxu0 %vm264_vm3, %v288_v11 }
 0x49f   :  { %793 = vmatpush3.bf16.xpose.msra.mxu0 %v444_v12  ;;  %794 = vmatprep.mubr.msk.bf16.mxu0 %vm956_vm1, %v955_v15 }
 0x4a0   :  { %804 = vmatprep.subr.bf16.mxu0 %v955_v15 }
 0x4a2   :  { %789 = vmatmul.mubr.msk.bf16.vlgmr.msra.gmra.mxu1 %vm169_vm2, %v387_v13 }
 0x4a3   :  { %800 = vmatprep.mubr.msk.bf16.mxu1 %vm956_vm1, %v955_v15 }
 0x4a6   :  { %795 = vmatmul.mubr.msk.bf16.vlgmr.msra.gmra.mxu0 %vm169_vm2, %v437_v14 }
 0x4a7   :  { %806 = vmatprep.mubr.msk.bf16.mxu0 %vm956_vm1, %v955_v15 }
 0x55a   :  { %v1077_v16 = vpop.f32.mrf.mxu1 }
 0x55c   :  { %v778_v17 = vpop.f32.mrf.mxu1 }
 0x55e   :  { %v335_v18 = vpop.f32.mrf.mxu1  ;;  %v1079_v19 = vpop.f32.mrf.mxu0 }
 0x560   :  { %v779_v20 = vpop.f32.mrf.mxu1  ;;  %v784_v21 = vpop.f32.mrf.mxu0 }
 0x562   :  { %v383_v22 = vpop.f32.mrf.mxu0  ;;  %v430_v23 = vpop.f32.mrf.mxu1 }
 0x563   :  { %v486_v24 = vsel %vm264_vm3, %v430_v23, -inf }
 0x564   :  { %487 = vmax.xlane.f32.xlu0 %v486_v24  ;;  %v785_v25 = vpop.f32.mrf.mxu0  ;;  %v790_v26 = vpop.f32.mrf.mxu1 }
 0x566   :  { %v433_v27 = vpop.f32.mrf.mxu1  ;;  %v480_v28 = vpop.f32.mrf.mxu0 }
 0x567   :  { %v489_v29 = vsel %vm264_vm3, %v480_v28, -inf }
 0x568   :  { %v791_v30 = vpop.f32.mrf.mxu1  ;;  %490 = vmax.xlane.f32.xlu1 %v489_v29  ;;  %v796_v31 = vpop.f32.mrf.mxu0 }
 0x56a   :  { %v483_v33 = vpop.f32.mrf.mxu0 }
 0x56c   :  { %v797_v34 = vpop.f32.mrf.mxu0 }
 0x579   :  { %558 = vrot.lane.b32.xlu1 %v1030_v36, %s960_s13 }
 0x5ed   :  { %v488_v35 = vpop.xlane.xlu0 %487 }
 0x5ee   :  { %v492_v37 = vsub.f32 %v430_v23, %v488_v35 }
 0x5f0   :  { %v494_v38 = vmul.f32 1.442695, %v492_v37 }
 0x5f1   :  { %v491_v39 = vpop.xlane.xlu1 %490 }
 0x5f2   :  { %854 = vpow2.f32 %v494_v38  ;;  %v493_v40 = vsub.f32 %v480_v28, %v491_v39 }
 0x5f4   :  { %v496_v41 = vmul.f32 1.442695, %v493_v40 }
 0x5f5   :  { %v559_v42 = vpop.permute.xlu1 %558 }
 0x5f6   :  { %856 = vpow2.f32 %v496_v41  ;;  %v564_v43 = vsel %vm294_vm4, %v559_v42, 0 }
 0x5f7   :  { %805 = vmatpush3.bf16.msra.mxu0 %v564_v43 }
 0x5ff   :  { %v855_v44 = vpop.eup %854 }
 0x600   :  { %v498_v45 = vsel %vm264_vm3, %v855_v44, 0.0 }
 0x601   :  { %499 = vadd.xlane.f32.xlu0 %v498_v45 }
 0x603   :  { %v857_v46 = vpop.eup %856 }
 0x604   :  { %v501_v47 = vsel %vm264_vm3, %v857_v46, 0.0 }
 0x605   :  { %502 = vadd.xlane.f32.xlu0 %v501_v47 }
 0x61b   :  { %510 = vrot.lane.b32.xlu0 %v1027_v32, %s960_s13 }
 0x68a   :  { %v500_v36 = vpop.xlane.xlu0 %499 }
 0x68b   :  { %858 = vrcp.f32 %v500_v36 }
 0x68e   :  { %v503_v48 = vpop.xlane.xlu0 %502 }
 0x68f   :  { %860 = vrcp.f32 %v503_v48 }
 0x692   :  { %v511_v49 = vpop.permute.xlu0 %510 }
 0x693   :  { %v516_v50 = vsel %vm294_vm4, %v511_v49, 0 }
 0x694   :  { %799 = vmatpush3.bf16.msra.mxu1 %v516_v50 }
 0x695   :  { %810 = vmatprep.subr.bf16.mxu1 %v955_v15 }
 0x698   :  { %v859_v51 = vpop.eup %858 }
 0x699   :  { %v506_v52 = vmul.f32 %v859_v51, %v855_v44 }
 0x69b   :  { %v508_v53 = vpack.c.bf16 %v506_v52, %v506_v52 }
 0x69c   :  { %v861_v54 = vpop.eup %860 }
 0x69d   :  { %801 = vmatmul.mubr.msk.bf16.vlgmr.msra.gmra.mxu1 %vm264_vm3, %v508_v53  ;;  %v507_v55 = vmul.f32 %v861_v54, %v857_v46 }
 0x69e   :  { %814 = vmatprep.mubr.msk.bf16.mxu1 %vm956_vm1, %v955_v15  ;;  %811 = vmatpush3.bf16.msra.mxu1 %v840_v56 }
 0x69f   :  { %v509_v32 = vpack.c.bf16 %v507_v55, %v507_v55  ;;  %812 = vmatprep.subr.bf16.mxu1 %v955_v15 }
 0x6a1   :  { %807 = vmatmul.mubr.msk.bf16.vlgmr.msra.gmra.mxu0 %vm264_vm3, %v509_v32 }
 0x6a2   :  { %813 = vmatpush3.bf16.msra.mxu1 %v841_v57 }
 0x75d   :  { %v552_v58 = vpop.f32.mrf.mxu1 }
 0x75f   :  { %v802_v59 = vpop.f32.mrf.mxu1 }
 0x761   :  { %v555_v60 = vpop.f32.mrf.mxu1  ;;  %v600_v61 = vpop.f32.mrf.mxu0 }
 0x762   :  { %v833_v62 = vpack.i.bf16 %v600_v61, %v552_v58 }
 0x763   :  { %v803_v63 = vpop.f32.mrf.mxu1  ;;  %v808_v0 = vpop.f32.mrf.mxu0 }
 0x764   :  { %834 = vrot.lane.b32.xlu1 %v833_v62, %s961_s14 }
 0x765   :  { %v603_v1 = vpop.f32.mrf.mxu0 }
 0x767   :  { %v809_v2 = vpop.f32.mrf.mxu0 }
 0x7d6   :  { %v835_v3 = vpop.permute.xlu1 %834 }
 0x7d7   :  { %v837_v4 = vunpack.i.h.bf16 %v835_v3  ;;  %v836_v5 = vunpack.i.l.bf16 %v835_v3 }
 0x7d9   :  { %v615_v6 = vsel %vm169_vm2, %v1079_v19, %v837_v4  ;;  %v614_v15 = vsel %vm169_vm2, %v1077_v16, %v836_v5 }
 0x7da   :  { %v731_v7 = vpack.c.bf16 %v615_v6, %v614_v15 }
 0x7dc   :  { %815 = vmatmul.mubr.msk.bf16.vlgmr.msra.gmra.mxu1 %vm65_vm0, %v731_v7 }
 0x89c   :  { %v683_v9 = vpop.f32.mrf.mxu1 }
 0x89d   :  { %v684_v10 = vadd.f32 %v724_v8, %v683_v9 }
 0x89e   :  { %v816_v11 = vpop.f32.mrf.mxu1 }
 0x89f   :  { %690 = vst [vmem:[#allocation8] sm:$0xff] %v684_v10 }
 0x8a0   :  { %v686_v12 = vpop.f32.mrf.mxu1 }
 0x8a1   :  { %v687_v13 = vadd.f32 %v724_v8, %v686_v12 }
 0x8a2   :  { %v817_v14 = vpop.f32.mrf.mxu1 }
 0x8a3   :  { %691 = vst [vmem:[#allocation8 + $0x8] sm:$0xff] %v687_v13 }
 0x8a4   :  { %933 = shalt.err (!%p930_p5)
}
 0x8a5   :  { %703 = dma.vmem_to_hbm [thread:$0]  %s698_s18, 256, %s1114_s5, [#allocation4], %s952_s28, %s952_s28, %s953_s29  }
 0x8a6   :  { %946 = dma.done.wait [#allocation4], 256  }
 0x8a7   :  { %947 = vsyncadd [#allocation4], 4294967040 }
 0x8a8   :  { %707 = vsyncpa [#allocation3], 1 }
 0x8a9   :  { %708 = vsyncpa [#allocation6], 1 }
 0x8aa   :  { %709 = vsyncpa [#allocation4], 1 }

</bundles_post_ra>
